<compile_context>
chip_gen: v5e
topology: v5e:2x2
jax: 0.10.0
libtpu: 0.0.40
codegen_flags: <defaults>
</compile_context>

<pallas_src>
import functools

import jax
import jax.numpy as jnp
import numpy as np
from jax.experimental import pallas as pl
from jax.experimental.pallas import tpu as pltpu


def gcn_kernel(x_ref, at_ref, abd_ref, w_ref, b_ref, o_ref, *,
               support_len, order, c_in, n_nodes, seq_len, c_out):
    """One batch element per grid step.

    x_ref:   (1, L*C, V)      x_f[n, l*C + c, v]  = x_nchw[n, c, v, l]
    at_ref:  (1, V, S*V)      at[n, v, s*V + w]   = A_s[n, w, v]     (stacked A^T)
    abd_ref: (1, S*V, S*V)    block-diagonal stack of the A_s^T
    w_ref:   (Cout, K*C)      raw 1x1-conv weight (no kron expansion)
    b_ref:   (1, L*Cout)      bias tiled over time, lanes ordered (l, o)
    o_ref:   (1, V, L*Cout)   out[n, v, l*Cout + o] = y_nchw[n, o, v, l]
    """
    C, V, L, S, Cout = c_in, n_nodes, seq_len, support_len, c_out

    # Load once; promote to f32 -- hops / accumulation stay f32 throughout
    # (review: no per-hop bf16 round trip; wider operands are free here).
    x_f = x_ref[0].astype(jnp.float32)         # (L*C, V)
    a_t = at_ref[0].astype(jnp.float32)        # (V, S*V)
    a_bd = abd_ref[0].astype(jnp.float32)      # (S*V, S*V)
    w = w_ref[...].astype(jnp.float32)         # (Cout, K*C)

    # ---- Fused graph propagation: one matmul per hop for all S supports. ----
    hops = []
    t = jnp.dot(x_f, a_t, preferred_element_type=jnp.float32)        # (L*C, S*V)
    hops.append(t)
    for _ in range(order - 1):
        t = jnp.dot(t, a_bd, preferred_element_type=jnp.float32)     # (L*C, S*V)
        hops.append(t)

    # ---- 1x1 conv: contract over the K*C channel axis only (no kron). ----
    ys = []
    for l in range(L):                         # static unroll, L is small
        r0 = l * C
        pieces = [x_f[r0:r0 + C, :]]           # identity term, (C, V)
        for s in range(S):
            for hop in hops:                   # per support: hop1, hop2, ...
                pieces.append(hop[r0:r0 + C, s * V:(s + 1) * V])      # (C, V)
        h_l = jnp.concatenate(pieces, axis=0)                         # (K*C, V)
        ys.append(jnp.dot(w, h_l, preferred_element_type=jnp.float32))  # (Cout, V)

    y_all = jnp.concatenate(ys, axis=0)        # (L*Cout, V), rows = (l, o)
    # Single lane-dense slab store: (V, L*Cout) = 128 lanes here.
    out = y_all.T + b_ref[...]
    # TODO(synk): dropout is eval-mode identity; training-mode dropout would
    # use pltpu.prng_seed / pltpu.prng_random_bits here.
    o_ref[0] = out.astype(o_ref.dtype)


@functools.partial(jax.jit, static_argnames=("order", "compute_dtype"))
def gcn_forward(x, supports, weight, bias, *, order=2, compute_dtype=jnp.float32):
    """x: (N, C, V, L); supports: (N, S, V, V); weight: (Cout, K*C); bias: (Cout,)."""
    N, C, V, L = x.shape
    S = supports.shape[1]
    K = order * S + 1
    Cout = weight.shape[0]
    assert weight.shape == (Cout, K * C)

    # Wrapper-side layout plumbing (XLA, in HBM): no in-kernel relayouts.
    # x_f[n, l*C + c, v] = x[n, c, v, l]
    x_f = jnp.transpose(x, (0, 3, 1, 2)).reshape(N, L * C, V).astype(compute_dtype)
    # Stacked transposed adjacencies: at[n, v, s*V + w] = supports[n, s, w, v]
    a_t = jnp.transpose(supports, (0, 3, 1, 2)).reshape(N, V, S * V).astype(compute_dtype)
    # Block-diagonal stack of A_s^T (for hops >= 2).
    blocks = jnp.transpose(supports, (0, 1, 3, 2))                    # (N, S, V, V)
    a_bd = jnp.einsum('nsvw,st->nsvtw', blocks,
                      jnp.eye(S, dtype=supports.dtype)).reshape(N, S * V, S * V)
    a_bd = a_bd.astype(compute_dtype)

    w_c = weight.astype(compute_dtype)                                # (Cout, K*C)
    b_l = jnp.tile(bias.astype(jnp.float32), L)[None, :]              # (1, L*Cout)

    kernel = functools.partial(
        gcn_kernel, support_len=S, order=order,
        c_in=C, n_nodes=V, seq_len=L, c_out=Cout)

    out = pl.pallas_call(
        kernel,
        out_shape=jax.ShapeDtypeStruct((N, V, L * Cout), x.dtype),
        grid_spec=pltpu.PrefetchScalarGridSpec(
            num_scalar_prefetch=0,
            # One batch element per step; N >= 2 keeps both v7x TCs busy.
            # (On single-TC v5e/v6e, N could be folded into the matmul rows
            #  with a batch-block-diagonal adjacency -- wrapper-only change.)
            grid=(N,),
            in_specs=[
                pl.BlockSpec((1, L * C, V), lambda n: (n, 0, 0)),
                pl.BlockSpec((1, V, S * V), lambda n: (n, 0, 0)),
                pl.BlockSpec((1, S * V, S * V), lambda n: (n, 0, 0)),
                # Weight / bias: constant index_maps -> VMEM-resident.
                pl.BlockSpec((Cout, K * C), lambda n: (0, 0)),
                pl.BlockSpec((1, L * Cout), lambda n: (0, 0)),
            ],
            out_specs=pl.BlockSpec((1, V, L * Cout), lambda n: (n, 0, 0)),
        ),
        compiler_params=pltpu.CompilerParams(
            dimension_semantics=("parallel",)),
    )(x_f, a_t, a_bd, w_c, b_l)

    # (N, V, L*Cout) -> (N, Cout, V, L): pure XLA layout plumbing.
    return out.reshape(N, V, L, Cout).transpose(0, 3, 1, 2)


def gcn_reference(x, supports, weight, bias, *, order=2):
    """Pure-JAX reference mirroring the PyTorch module (eval mode)."""
    out = [x]
    S = supports.shape[1]
    for s in range(S):
        a = supports[:, s]                         # (N, V, V)
        x1 = jnp.einsum('ncvl,nwv->ncwl', x, a)
        out.append(x1)
        for _ in range(2, order + 1):
            x2 = jnp.einsum('ncvl,nwv->ncwl', x1, a)
            out.append(x2)
            x1 = x2
    h = jnp.concatenate(out, axis=1)
    return jnp.einsum('oc,ncvl->novl', weight, h) + bias[None, :, None, None]


if __name__ == "__main__":
    # Small, deterministic shapes consistent with the module.
    N, C_IN, C_OUT = 2, 8, 16      # batch, in-channels, out-channels
    V, L = 16, 8                   # nodes, time steps
    SUPPORT_LEN, ORDER = 3, 2
    K = ORDER * SUPPORT_LEN + 1    # 7 concatenated terms

    key = jax.random.PRNGKey(0)
    kx, ka, kw, kb = jax.random.split(key, 4)

    x = jax.random.normal(kx, (N, C_IN, V, L), dtype=jnp.float32)
    supports_raw = jax.random.normal(ka, (N, SUPPORT_LEN, V, V), dtype=jnp.float32)
    supports = jax.nn.softmax(supports_raw, axis=-1)
    weight = 0.1 * jax.random.normal(kw, (C_OUT, K * C_IN), dtype=jnp.float32)
    bias = 0.1 * jax.random.normal(kb, (C_OUT,), dtype=jnp.float32)

    y_ref = gcn_reference(x, supports, weight, bias, order=ORDER)

    # Default f32 path: matches the reference tightly.
    y_f32 = gcn_forward(x, supports, weight, bias, order=ORDER,
                        compute_dtype=jnp.float32)
    y_f32 = jax.block_until_ready(y_f32)
    np.testing.assert_allclose(np.asarray(y_f32), np.asarray(y_ref),
                               rtol=1e-4, atol=1e-4)

    # bf16 input path (f32 propagation / accumulation inside the kernel).
    y_bf16 = gcn_forward(x, supports, weight, bias, order=ORDER,
                         compute_dtype=jnp.bfloat16)
    y_bf16 = jax.block_until_ready(y_bf16)
    np.testing.assert_allclose(np.asarray(y_bf16), np.asarray(y_ref),
                               rtol=5e-2, atol=5e-2)

    print("KERNEL_OK")
</pallas_src>

<mosaic_0001>
module attributes {stable_mosaic.version = 11 : i64} {
  func.func @gcn_kernel(%arg0: i32, %arg1: memref<1x64x16xf32, #tpu.memory_space<vmem>>, %arg2: memref<1x16x48xf32, #tpu.memory_space<vmem>>, %arg3: memref<1x48x48xf32, #tpu.memory_space<vmem>>, %arg4: memref<16x56xf32, #tpu.memory_space<vmem>>, %arg5: memref<1x128xf32, #tpu.memory_space<vmem>>, %arg6: memref<1x16x128xf32, #tpu.memory_space<vmem>>) attributes {dimension_semantics = [#tpu.dimension_semantics<parallel>], iteration_bounds = array<i64: 2>, scalar_prefetch = 0 : i64, scratch_operands = 0 : i64, tpu.core_type = #tpu.core_type<tc>, window_params = [{transform_indices = @transform_0, window_bounds = array<i64: 1, 64, 16>}, {transform_indices = @transform_1, window_bounds = array<i64: 1, 16, 48>}, {transform_indices = @transform_2, window_bounds = array<i64: 1, 48, 48>}, {pipeline_mode = #tpu.pipeline_mode<synchronous>, transform_indices = @transform_3, window_bounds = array<i64: 16, 56>}, {pipeline_mode = #tpu.pipeline_mode<synchronous>, transform_indices = @transform_4, window_bounds = array<i64: 1, 128>}, {transform_indices = @transform_5, window_bounds = array<i64: 1, 16, 128>}]} {
    %c0 = arith.constant 0 : index
    %c0_0 = arith.constant 0 : index
    %c0_1 = arith.constant 0 : index
    %0 = vector.load %arg1[%c0, %c0_0, %c0_1] : memref<1x64x16xf32, #tpu.memory_space<vmem>>, vector<1x64x16xf32>
    %1 = vector.shape_cast %0 : vector<1x64x16xf32> to vector<64x16xf32>
    %c0_2 = arith.constant 0 : index
    %c0_3 = arith.constant 0 : index
    %c0_4 = arith.constant 0 : index
    %2 = vector.load %arg2[%c0_2, %c0_3, %c0_4] : memref<1x16x48xf32, #tpu.memory_space<vmem>>, vector<1x16x48xf32>
    %3 = vector.shape_cast %2 : vector<1x16x48xf32> to vector<16x48xf32>
    %c0_5 = arith.constant 0 : index
    %c0_6 = arith.constant 0 : index
    %c0_7 = arith.constant 0 : index
    %4 = vector.load %arg3[%c0_5, %c0_6, %c0_7] : memref<1x48x48xf32, #tpu.memory_space<vmem>>, vector<1x48x48xf32>
    %5 = vector.shape_cast %4 : vector<1x48x48xf32> to vector<48x48xf32>
    %c0_8 = arith.constant 0 : index
    %c0_9 = arith.constant 0 : index
    %6 = vector.load %arg4[%c0_8, %c0_9] : memref<16x56xf32, #tpu.memory_space<vmem>>, vector<16x56xf32>
    %cst = arith.constant dense<0.000000e+00> : vector<64x48xf32>
    %7 = tpu.matmul %1, %3, %cst {dimension_numbers = #tpu.dot_dimension_numbers<[1], [0], [0], [1], [0, 0, 1, 1], [], []>} : vector<64x16xf32>, vector<16x48xf32>, vector<64x48xf32> -> vector<64x48xf32>
    %cst_10 = arith.constant dense<0.000000e+00> : vector<64x48xf32>
    %8 = tpu.matmul %7, %5, %cst_10 {dimension_numbers = #tpu.dot_dimension_numbers<[1], [0], [0], [1], [0, 0, 1, 1], [], []>} : vector<64x48xf32>, vector<48x48xf32>, vector<64x48xf32> -> vector<64x48xf32>
    %9 = vector.extract_strided_slice %1 {offsets = [0, 0], sizes = [8, 16], strides = [1, 1]} : vector<64x16xf32> to vector<8x16xf32>
    %10 = vector.extract_strided_slice %7 {offsets = [0, 0], sizes = [8, 16], strides = [1, 1]} : vector<64x48xf32> to vector<8x16xf32>
    %11 = vector.extract_strided_slice %8 {offsets = [0, 0], sizes = [8, 16], strides = [1, 1]} : vector<64x48xf32> to vector<8x16xf32>
    %12 = vector.extract_strided_slice %7 {offsets = [0, 16], sizes = [8, 16], strides = [1, 1]} : vector<64x48xf32> to vector<8x16xf32>
    %13 = vector.extract_strided_slice %8 {offsets = [0, 16], sizes = [8, 16], strides = [1, 1]} : vector<64x48xf32> to vector<8x16xf32>
    %14 = vector.extract_strided_slice %7 {offsets = [0, 32], sizes = [8, 16], strides = [1, 1]} : vector<64x48xf32> to vector<8x16xf32>
    %15 = vector.extract_strided_slice %8 {offsets = [0, 32], sizes = [8, 16], strides = [1, 1]} : vector<64x48xf32> to vector<8x16xf32>
    %16 = tpu.concatenate %9, %10, %11, %12, %13, %14, %15 in 0 : vector<8x16xf32>, vector<8x16xf32>, vector<8x16xf32>, vector<8x16xf32>, vector<8x16xf32>, vector<8x16xf32>, vector<8x16xf32> -> vector<56x16xf32>
    %cst_11 = arith.constant dense<0.000000e+00> : vector<16x16xf32>
    %17 = tpu.matmul %6, %16, %cst_11 {dimension_numbers = #tpu.dot_dimension_numbers<[1], [0], [0], [1], [0, 0, 1, 1], [], []>} : vector<16x56xf32>, vector<56x16xf32>, vector<16x16xf32> -> vector<16x16xf32>
    %18 = vector.extract_strided_slice %1 {offsets = [8, 0], sizes = [8, 16], strides = [1, 1]} : vector<64x16xf32> to vector<8x16xf32>
    %19 = vector.extract_strided_slice %7 {offsets = [8, 0], sizes = [8, 16], strides = [1, 1]} : vector<64x48xf32> to vector<8x16xf32>
    %20 = vector.extract_strided_slice %8 {offsets = [8, 0], sizes = [8, 16], strides = [1, 1]} : vector<64x48xf32> to vector<8x16xf32>
    %21 = vector.extract_strided_slice %7 {offsets = [8, 16], sizes = [8, 16], strides = [1, 1]} : vector<64x48xf32> to vector<8x16xf32>
    %22 = vector.extract_strided_slice %8 {offsets = [8, 16], sizes = [8, 16], strides = [1, 1]} : vector<64x48xf32> to vector<8x16xf32>
    %23 = vector.extract_strided_slice %7 {offsets = [8, 32], sizes = [8, 16], strides = [1, 1]} : vector<64x48xf32> to vector<8x16xf32>
    %24 = vector.extract_strided_slice %8 {offsets = [8, 32], sizes = [8, 16], strides = [1, 1]} : vector<64x48xf32> to vector<8x16xf32>
    %25 = tpu.concatenate %18, %19, %20, %21, %22, %23, %24 in 0 : vector<8x16xf32>, vector<8x16xf32>, vector<8x16xf32>, vector<8x16xf32>, vector<8x16xf32>, vector<8x16xf32>, vector<8x16xf32> -> vector<56x16xf32>
    %cst_12 = arith.constant dense<0.000000e+00> : vector<16x16xf32>
    %26 = tpu.matmul %6, %25, %cst_12 {dimension_numbers = #tpu.dot_dimension_numbers<[1], [0], [0], [1], [0, 0, 1, 1], [], []>} : vector<16x56xf32>, vector<56x16xf32>, vector<16x16xf32> -> vector<16x16xf32>
    %27 = vector.extract_strided_slice %1 {offsets = [16, 0], sizes = [8, 16], strides = [1, 1]} : vector<64x16xf32> to vector<8x16xf32>
    %28 = vector.extract_strided_slice %7 {offsets = [16, 0], sizes = [8, 16], strides = [1, 1]} : vector<64x48xf32> to vector<8x16xf32>
    %29 = vector.extract_strided_slice %8 {offsets = [16, 0], sizes = [8, 16], strides = [1, 1]} : vector<64x48xf32> to vector<8x16xf32>
    %30 = vector.extract_strided_slice %7 {offsets = [16, 16], sizes = [8, 16], strides = [1, 1]} : vector<64x48xf32> to vector<8x16xf32>
    %31 = vector.extract_strided_slice %8 {offsets = [16, 16], sizes = [8, 16], strides = [1, 1]} : vector<64x48xf32> to vector<8x16xf32>
    %32 = vector.extract_strided_slice %7 {offsets = [16, 32], sizes = [8, 16], strides = [1, 1]} : vector<64x48xf32> to vector<8x16xf32>
    %33 = vector.extract_strided_slice %8 {offsets = [16, 32], sizes = [8, 16], strides = [1, 1]} : vector<64x48xf32> to vector<8x16xf32>
    %34 = tpu.concatenate %27, %28, %29, %30, %31, %32, %33 in 0 : vector<8x16xf32>, vector<8x16xf32>, vector<8x16xf32>, vector<8x16xf32>, vector<8x16xf32>, vector<8x16xf32>, vector<8x16xf32> -> vector<56x16xf32>
    %cst_13 = arith.constant dense<0.000000e+00> : vector<16x16xf32>
    %35 = tpu.matmul %6, %34, %cst_13 {dimension_numbers = #tpu.dot_dimension_numbers<[1], [0], [0], [1], [0, 0, 1, 1], [], []>} : vector<16x56xf32>, vector<56x16xf32>, vector<16x16xf32> -> vector<16x16xf32>
    %36 = vector.extract_strided_slice %1 {offsets = [24, 0], sizes = [8, 16], strides = [1, 1]} : vector<64x16xf32> to vector<8x16xf32>
    %37 = vector.extract_strided_slice %7 {offsets = [24, 0], sizes = [8, 16], strides = [1, 1]} : vector<64x48xf32> to vector<8x16xf32>
    %38 = vector.extract_strided_slice %8 {offsets = [24, 0], sizes = [8, 16], strides = [1, 1]} : vector<64x48xf32> to vector<8x16xf32>
    %39 = vector.extract_strided_slice %7 {offsets = [24, 16], sizes = [8, 16], strides = [1, 1]} : vector<64x48xf32> to vector<8x16xf32>
    %40 = vector.extract_strided_slice %8 {offsets = [24, 16], sizes = [8, 16], strides = [1, 1]} : vector<64x48xf32> to vector<8x16xf32>
    %41 = vector.extract_strided_slice %7 {offsets = [24, 32], sizes = [8, 16], strides = [1, 1]} : vector<64x48xf32> to vector<8x16xf32>
    %42 = vector.extract_strided_slice %8 {offsets = [24, 32], sizes = [8, 16], strides = [1, 1]} : vector<64x48xf32> to vector<8x16xf32>
    %43 = tpu.concatenate %36, %37, %38, %39, %40, %41, %42 in 0 : vector<8x16xf32>, vector<8x16xf32>, vector<8x16xf32>, vector<8x16xf32>, vector<8x16xf32>, vector<8x16xf32>, vector<8x16xf32> -> vector<56x16xf32>
    %cst_14 = arith.constant dense<0.000000e+00> : vector<16x16xf32>
    %44 = tpu.matmul %6, %43, %cst_14 {dimension_numbers = #tpu.dot_dimension_numbers<[1], [0], [0], [1], [0, 0, 1, 1], [], []>} : vector<16x56xf32>, vector<56x16xf32>, vector<16x16xf32> -> vector<16x16xf32>
    %45 = vector.extract_strided_slice %1 {offsets = [32, 0], sizes = [8, 16], strides = [1, 1]} : vector<64x16xf32> to vector<8x16xf32>
    %46 = vector.extract_strided_slice %7 {offsets = [32, 0], sizes = [8, 16], strides = [1, 1]} : vector<64x48xf32> to vector<8x16xf32>
    %47 = vector.extract_strided_slice %8 {offsets = [32, 0], sizes = [8, 16], strides = [1, 1]} : vector<64x48xf32> to vector<8x16xf32>
    %48 = vector.extract_strided_slice %7 {offsets = [32, 16], sizes = [8, 16], strides = [1, 1]} : vector<64x48xf32> to vector<8x16xf32>
    %49 = vector.extract_strided_slice %8 {offsets = [32, 16], sizes = [8, 16], strides = [1, 1]} : vector<64x48xf32> to vector<8x16xf32>
    %50 = vector.extract_strided_slice %7 {offsets = [32, 32], sizes = [8, 16], strides = [1, 1]} : vector<64x48xf32> to vector<8x16xf32>
    %51 = vector.extract_strided_slice %8 {offsets = [32, 32], sizes = [8, 16], strides = [1, 1]} : vector<64x48xf32> to vector<8x16xf32>
    %52 = tpu.concatenate %45, %46, %47, %48, %49, %50, %51 in 0 : vector<8x16xf32>, vector<8x16xf32>, vector<8x16xf32>, vector<8x16xf32>, vector<8x16xf32>, vector<8x16xf32>, vector<8x16xf32> -> vector<56x16xf32>
    %cst_15 = arith.constant dense<0.000000e+00> : vector<16x16xf32>
    %53 = tpu.matmul %6, %52, %cst_15 {dimension_numbers = #tpu.dot_dimension_numbers<[1], [0], [0], [1], [0, 0, 1, 1], [], []>} : vector<16x56xf32>, vector<56x16xf32>, vector<16x16xf32> -> vector<16x16xf32>
    %54 = vector.extract_strided_slice %1 {offsets = [40, 0], sizes = [8, 16], strides = [1, 1]} : vector<64x16xf32> to vector<8x16xf32>
    %55 = vector.extract_strided_slice %7 {offsets = [40, 0], sizes = [8, 16], strides = [1, 1]} : vector<64x48xf32> to vector<8x16xf32>
    %56 = vector.extract_strided_slice %8 {offsets = [40, 0], sizes = [8, 16], strides = [1, 1]} : vector<64x48xf32> to vector<8x16xf32>
    %57 = vector.extract_strided_slice %7 {offsets = [40, 16], sizes = [8, 16], strides = [1, 1]} : vector<64x48xf32> to vector<8x16xf32>
    %58 = vector.extract_strided_slice %8 {offsets = [40, 16], sizes = [8, 16], strides = [1, 1]} : vector<64x48xf32> to vector<8x16xf32>
    %59 = vector.extract_strided_slice %7 {offsets = [40, 32], sizes = [8, 16], strides = [1, 1]} : vector<64x48xf32> to vector<8x16xf32>
    %60 = vector.extract_strided_slice %8 {offsets = [40, 32], sizes = [8, 16], strides = [1, 1]} : vector<64x48xf32> to vector<8x16xf32>
    %61 = tpu.concatenate %54, %55, %56, %57, %58, %59, %60 in 0 : vector<8x16xf32>, vector<8x16xf32>, vector<8x16xf32>, vector<8x16xf32>, vector<8x16xf32>, vector<8x16xf32>, vector<8x16xf32> -> vector<56x16xf32>
    %cst_16 = arith.constant dense<0.000000e+00> : vector<16x16xf32>
    %62 = tpu.matmul %6, %61, %cst_16 {dimension_numbers = #tpu.dot_dimension_numbers<[1], [0], [0], [1], [0, 0, 1, 1], [], []>} : vector<16x56xf32>, vector<56x16xf32>, vector<16x16xf32> -> vector<16x16xf32>
    %63 = vector.extract_strided_slice %1 {offsets = [48, 0], sizes = [8, 16], strides = [1, 1]} : vector<64x16xf32> to vector<8x16xf32>
    %64 = vector.extract_strided_slice %7 {offsets = [48, 0], sizes = [8, 16], strides = [1, 1]} : vector<64x48xf32> to vector<8x16xf32>
    %65 = vector.extract_strided_slice %8 {offsets = [48, 0], sizes = [8, 16], strides = [1, 1]} : vector<64x48xf32> to vector<8x16xf32>
    %66 = vector.extract_strided_slice %7 {offsets = [48, 16], sizes = [8, 16], strides = [1, 1]} : vector<64x48xf32> to vector<8x16xf32>
    %67 = vector.extract_strided_slice %8 {offsets = [48, 16], sizes = [8, 16], strides = [1, 1]} : vector<64x48xf32> to vector<8x16xf32>
    %68 = vector.extract_strided_slice %7 {offsets = [48, 32], sizes = [8, 16], strides = [1, 1]} : vector<64x48xf32> to vector<8x16xf32>
    %69 = vector.extract_strided_slice %8 {offsets = [48, 32], sizes = [8, 16], strides = [1, 1]} : vector<64x48xf32> to vector<8x16xf32>
    %70 = tpu.concatenate %63, %64, %65, %66, %67, %68, %69 in 0 : vector<8x16xf32>, vector<8x16xf32>, vector<8x16xf32>, vector<8x16xf32>, vector<8x16xf32>, vector<8x16xf32>, vector<8x16xf32> -> vector<56x16xf32>
    %cst_17 = arith.constant dense<0.000000e+00> : vector<16x16xf32>
    %71 = tpu.matmul %6, %70, %cst_17 {dimension_numbers = #tpu.dot_dimension_numbers<[1], [0], [0], [1], [0, 0, 1, 1], [], []>} : vector<16x56xf32>, vector<56x16xf32>, vector<16x16xf32> -> vector<16x16xf32>
    %72 = vector.extract_strided_slice %1 {offsets = [56, 0], sizes = [8, 16], strides = [1, 1]} : vector<64x16xf32> to vector<8x16xf32>
    %73 = vector.extract_strided_slice %7 {offsets = [56, 0], sizes = [8, 16], strides = [1, 1]} : vector<64x48xf32> to vector<8x16xf32>
    %74 = vector.extract_strided_slice %8 {offsets = [56, 0], sizes = [8, 16], strides = [1, 1]} : vector<64x48xf32> to vector<8x16xf32>
    %75 = vector.extract_strided_slice %7 {offsets = [56, 16], sizes = [8, 16], strides = [1, 1]} : vector<64x48xf32> to vector<8x16xf32>
    %76 = vector.extract_strided_slice %8 {offsets = [56, 16], sizes = [8, 16], strides = [1, 1]} : vector<64x48xf32> to vector<8x16xf32>
    %77 = vector.extract_strided_slice %7 {offsets = [56, 32], sizes = [8, 16], strides = [1, 1]} : vector<64x48xf32> to vector<8x16xf32>
    %78 = vector.extract_strided_slice %8 {offsets = [56, 32], sizes = [8, 16], strides = [1, 1]} : vector<64x48xf32> to vector<8x16xf32>
    %79 = tpu.concatenate %72, %73, %74, %75, %76, %77, %78 in 0 : vector<8x16xf32>, vector<8x16xf32>, vector<8x16xf32>, vector<8x16xf32>, vector<8x16xf32>, vector<8x16xf32>, vector<8x16xf32> -> vector<56x16xf32>
    %cst_18 = arith.constant dense<0.000000e+00> : vector<16x16xf32>
    %80 = tpu.matmul %6, %79, %cst_18 {dimension_numbers = #tpu.dot_dimension_numbers<[1], [0], [0], [1], [0, 0, 1, 1], [], []>} : vector<16x56xf32>, vector<56x16xf32>, vector<16x16xf32> -> vector<16x16xf32>
    %81 = tpu.concatenate %17, %26, %35, %44, %53, %62, %71, %80 in 0 : vector<16x16xf32>, vector<16x16xf32>, vector<16x16xf32>, vector<16x16xf32>, vector<16x16xf32>, vector<16x16xf32>, vector<16x16xf32>, vector<16x16xf32> -> vector<128x16xf32>
    %82 = tpu.transpose %81, [1, 0] : vector<128x16xf32> -> vector<16x128xf32>
    %c0_19 = arith.constant 0 : index
    %c0_20 = arith.constant 0 : index
    %83 = vector.load %arg5[%c0_19, %c0_20] : memref<1x128xf32, #tpu.memory_space<vmem>>, vector<1x128xf32>
    %84 = vector.broadcast %83 : vector<1x128xf32> to vector<16x128xf32>
    %85 = arith.addf %82, %84 : vector<16x128xf32>
    %c0_21 = arith.constant 0 : index
    %c0_22 = arith.constant 0 : index
    %c0_23 = arith.constant 0 : index
    %86 = vector.load %arg6[%c0_21, %c0_22, %c0_23] : memref<1x16x128xf32, #tpu.memory_space<vmem>>, vector<1x16x128xf32>
    %87 = vector.shape_cast %86 : vector<1x16x128xf32> to vector<16x128xf32>
    %88 = vector.shape_cast %85 : vector<16x128xf32> to vector<1x16x128xf32>
    tpu.vector_store %arg6[%c0_21, %c0_22, %c0_23], %88 {strides = array<i32>} : memref<1x16x128xf32, #tpu.memory_space<vmem>>, vector<1x16x128xf32>,
    return
  }
  func.func @transform_0(%arg0: i32) -> (i32, i32, i32) {
    %c0_i32 = arith.constant 0 : i32
    %c0_i32_0 = arith.constant 0 : i32
    %c0_i32_1 = arith.constant 0 : i32
    return %arg0, %c0_i32, %c0_i32_0 : i32, i32, i32
  }
  func.func @transform_1(%arg0: i32) -> (i32, i32, i32) {
    %c0_i32 = arith.constant 0 : i32
    %c0_i32_0 = arith.constant 0 : i32
    %c0_i32_1 = arith.constant 0 : i32
    return %arg0, %c0_i32, %c0_i32_0 : i32, i32, i32
  }
  func.func @transform_2(%arg0: i32) -> (i32, i32, i32) {
    %c0_i32 = arith.constant 0 : i32
    %c0_i32_0 = arith.constant 0 : i32
    %c0_i32_1 = arith.constant 0 : i32
    return %arg0, %c0_i32, %c0_i32_0 : i32, i32, i32
  }
  func.func @transform_3(%arg0: i32) -> (i32, i32) {
    %c0_i32 = arith.constant 0 : i32
    %c0_i32_0 = arith.constant 0 : i32
    %c0_i32_1 = arith.constant 0 : i32
    return %c0_i32, %c0_i32_0 : i32, i32
  }
  func.func @transform_4(%arg0: i32) -> (i32, i32) {
    %c0_i32 = arith.constant 0 : i32
    %c0_i32_0 = arith.constant 0 : i32
    %c0_i32_1 = arith.constant 0 : i32
    return %c0_i32, %c0_i32_0 : i32, i32
  }
  func.func @transform_5(%arg0: i32) -> (i32, i32, i32) {
    %c0_i32 = arith.constant 0 : i32
    %c0_i32_0 = arith.constant 0 : i32
    %c0_i32_1 = arith.constant 0 : i32
    return %arg0, %c0_i32, %c0_i32_0 : i32, i32, i32
  }
}

</mosaic_0001>

<bundles_post_ra>
// kernel: tile.8
= control target key start
LH: loop header
LB: loop body
LE: loop exit
PB: predicated region body
PF: predicated region fallthrough
CT: control target
= control target key end

     0   :  { %s22_s0 = inlined_call_operand.vmem [shape: f32[16], index: 0, kind: input, shape index: {}]   ;;  %s23_s1 = inlined_call_operand.vmem [shape: f32[8,16], index: 1, kind: output, shape index: {}]  }
   0x1   :  { %v4_v0 = vld [vmem:[%s22_s0] ss:$0 sm:$0xff] }
   0x2   :  { %5 = vst [vmem:[%s23_s1] sm:$0xff] %v4_v0 }

// kernel: tile.9
= control target key start
LH: loop header
LB: loop body
LE: loop exit
PB: predicated region body
PF: predicated region fallthrough
CT: control target
= control target key end

     0   :  { %s67_s10 = smov 112   ;;  %s68_s11 = smov 80   ;;  %vm3_vm0 = vcmask 130048   ;;  %vm9_vm1 = vcmask 1048448   ;;  %vm15_vm2 = vcmask 917248   ;;  %vm21_vm3 = vcmask 786048   ;;  %s111_s0 = inlined_call_operand.vmem [shape: f32[8,16], index: 0, kind: input, shape index: {}]   ;;  %s112_s1 = inlined_call_operand.vmem [shape: f32[1,128], index: 1, kind: output, shape index: {}]  }
   0x1   :  { %v53_v0 = vld [vmem:[%s111_s0 + $0x7] sm:$0x1]   ;;  %v55_v1 = vld [vmem:[%s111_s0 + $0x5] sm:$0x1]   ;;  %v57_v2 = vld [vmem:[%s111_s0 + $0x3] sm:$0x1]  }
   0x2   :  { %7 = vrot.lane.b32.xlu0 %v53_v0, %s67_s10  ;;  %19 = vrot.lane.b32.xlu1 %v55_v1, %s68_s11  ;;  %s69_s14 = smov 48   ;;  %v54_v3 = vld [vmem:[%s111_s0 + $0x6] sm:$0x1]   ;;  %v56_v4 = vld [vmem:[%s111_s0 + $0x4] sm:$0x1]   ;;  %s70_s21 = smov 96  }
   0x3   :  { %31 = vrot.lane.b32.xlu2 %v57_v2, %s69_s14  ;;  %v58_v5 = vld [vmem:[%s111_s0 + $0x2] sm:$0x1]   ;;  %s71_s22 = smov 64   ;;  %s72_s23 = smov 32   ;;  %v59_v6 = vld [vmem:[%s111_s0 + $0x1] sm:$0x1]  }
   0x4   :  { %s73_s26 = smov 16   ;;  %v2_v7 = vld [vmem:[%s111_s0] sm:$0x1]   ;;  %vm27_vm4 = vcmask 654848   ;;  %vm33_vm5 = vcmask 523648   ;;  %vm39_vm6 = vcmask 392448  }
   0x5   :  { %4 = vst.msk [vmem:[#allocation0] sm:$0x1] %vm3_vm0, %v2_v7   ;;  %vm45_vm7 = vcmask 261248  }
   0xa   :  { %13 = vrot.lane.b32.xlu0 %v54_v3, %s70_s21  ;;  %25 = vrot.lane.b32.xlu1 %v56_v4, %s71_s22 }
   0xb   :  { %37 = vrot.lane.b32.xlu2 %v58_v5, %s72_s23 }
  0x12   :  { %43 = vrot.lane.b32.xlu0 %v59_v6, %s73_s26 }
  0x5d   :  { %v32_v8 = vpop.permute.xlu2 %31  }
  0x65   :  { %v38_v9 = vpop.permute.xlu2 %37  }
  0x74   :  { %v8_v10 = vpop.permute.xlu0 %7   ;;  %v20_v11 = vpop.permute.xlu1 %19  }
  0x75   :  { %10 = vst.msk [vmem:[#allocation0] sm:$0x1] %vm9_vm1, %v8_v10  }
  0x7c   :  { %v14_v12 = vpop.permute.xlu0 %13   ;;  %v26_v13 = vpop.permute.xlu1 %25  }
  0x7d   :  { %16 = vst.msk [vmem:[#allocation0] sm:$0x1] %vm15_vm2, %v14_v12  }
  0x7e   :  { %22 = vst.msk [vmem:[#allocation0] sm:$0x1] %vm21_vm3, %v20_v11  }
  0x7f   :  { %28 = vst.msk [vmem:[#allocation0] sm:$0x1] %vm27_vm4, %v26_v13  }
  0x80   :  { %34 = vst.msk [vmem:[#allocation0] sm:$0x1] %vm33_vm5, %v32_v8  }
  0x81   :  { %40 = vst.msk [vmem:[#allocation0] sm:$0x1] %vm39_vm6, %v38_v9  }
  0x84   :  { %v44_v14 = vpop.permute.xlu0 %43  }
  0x85   :  { %46 = vst.msk [vmem:[#allocation0] sm:$0x1] %vm45_vm7, %v44_v14  }
  0x8c   :  { %v49_v15 = vld [vmem:[#allocation0] sm:$0x1] }
  0x8d   :  { %52 = vst [vmem:[%s112_s1] sm:$0x1] %v49_v15 }

// kernel: gcn_forward.1
= control target key start
LH: loop header
LB: loop body
LE: loop exit
PB: predicated region body
PF: predicated region fallthrough
CT: control target
= control target key end

     0   :  { %s1017_s18 = smov 0   ;;  %s1227_s0 = inlined_call_operand.vmem [shape: f32[2,64,16], index: 0, kind: input, shape index: {}]   ;;  %s1228_s1 = inlined_call_operand.vmem [shape: f32[2,16,48], index: 1, kind: input, shape index: {}]   ;;  %s1229_s2 = inlined_call_operand.vmem [shape: f32[2,48,48], index: 2, kind: input, shape index: {}]   ;;  %s1230_s3 = inlined_call_operand.vmem [shape: f32[16,56], index: 3, kind: input, shape index: {}]   ;;  %s1231_s4 = inlined_call_operand.vmem [shape: f32[1,128], index: 4, kind: input, shape index: {}]   ;;  %s1232_s5 = inlined_call_operand.vmem [shape: f32[2,16,128], index: 5, kind: output, shape index: {}]  }
   0x1 LB: > { %s829_s19 = sadd.s32 4294967295, %s983_s18   ;;  %p833_p0 = scmp.ge.s32.totalorder %s983_s18, 1  ;;  %s983_s18 = sphi %s1017_s18, %s15_s18  }
   0x2   : > { %p207_p1 = scmp.lt.s32.totalorder %s983_s18, 3 }
   0x4   : > { %p208_p2 = pnand %p833_p0, %p207_p1 }
   0x5   : > { %p245_p3 = scmp.lt.s32.totalorder (!%p208_p2), %s829_s19, 1  ;;  %s985_s7 = smov (!%p208_p2), 112  }
   0x6   : > { %211 = sbr.rel (%p208_p2) target bundleno = 710 (0x2c6), region = 40  ;;  %s986_s8 = smov (!%p208_p2), 96  }
   0xb   : > { %s1234_s19 = smov (!%p245_p3, %s829_s19), 1  ;;  %vm283_vm0 = vcmask 130048   ;;  %vm349_vm1 = vcmask 392192   ;;  %v1153_v54 = vld [vmem:[%s1230_s3] sm:$0xff]  ;;  %vm428_vm2 = vcmask 457728   ;;  %v1162_v61 = vld [vmem:[%s1230_s3 + $0x8] sm:$0xff] }
   0xc   : > { %s875_s20 = sshll.u32 %s1234_s19, 6  ;;  %s876_s21 = sshll.u32 %s1234_s19, 4 }
   0xd   : > { %s1032_s24 = scalar_lea.vmem %s1227_s0, %s875_s20  ;;  %s254_s27 = scalar_lea.vmem %s1228_s1, %s876_s21 }
   0xe   : > { %v274_v0 = vld [vmem:[%s254_s27 + $0x8] sm:$0xff]  ;;  %v273_v1 = vld [vmem:[%s254_s27] sm:$0xff]  ;;  %v1050_v4 = vld [vmem:[%s1032_s24 + $0x10] sm:$0xff]  ;;  %s885_s28 = smul.u32 48, %s1234_s19  ;;  %s264_s17 = scalar_lea.vmem %s1232_s5, %s876_s21 }
   0xf   : > { %322 = vmatpush.msra.mxu0 %v274_v0  ;;  %v1040_v2 = vld [vmem:[%s1032_s24] sm:$0xff]  ;;  %v1045_v3 = vld [vmem:[%s1032_s24 + $0x8] sm:$0xff]  ;;  %v1056_v5 = vld [vmem:[%s1032_s24 + $0x18] sm:$0xff] }
  0x10   : > { %s259_s6 = scalar_lea.vmem %s1229_s2, %s885_s28  ;;  %v1064_v10 = vld [vmem:[%s1032_s24 + $0x20] sm:$0xff]  ;;  %v1069_v12 = vld [vmem:[%s1032_s24 + $0x28] sm:$0xff]  ;;  %v1074_v13 = vld [vmem:[%s1032_s24 + $0x30] sm:$0xff] }
  0x11   : > { %323 = vmatpush.msra.mxu0 %v273_v1  ;;  %v280_v6 = vld [vmem:[%s259_s6 + $0x28] sm:$0xff]  ;;  %v279_v7 = vld [vmem:[%s259_s6 + $0x20] sm:$0xff]  ;;  %v278_v8 = vld [vmem:[%s259_s6 + $0x18] sm:$0xff] }
  0x12   : > { %841 = vmatmul.msk.f32.vlgmr.msra.gmra.mxu0 %vm283_vm0, %v1040_v2  ;;  %384 = vmatpush.msra.mxu1 %v280_v6  ;;  %v277_v9 = vld [vmem:[%s259_s6 + $0x10] sm:$0xff]  ;;  %v276_v11 = vld [vmem:[%s259_s6 + $0x8] sm:$0xff]  ;;  %v1079_v14 = vld [vmem:[%s1032_s24 + $0x38] sm:$0xff] }
  0x13   : > { %v275_v15 = vld [vmem:[%s259_s6] sm:$0xff] }
  0x14   : > { %385 = vmatpush.msra.mxu1 %v279_v7 }
  0x16   : > { %386 = vmatpush.msra.mxu1 %v278_v8 }
  0x18   : > { %387 = vmatpush.msra.mxu1 %v277_v9 }
  0x1a   : > { %842 = vmatmul.msk.f32.gmra.mxu0 %vm283_vm0, %v1045_v3  ;;  %388 = vmatpush.msra.mxu1 %v276_v11 }
  0x1c   : > { %389 = vmatpush.msra.mxu1 %v275_v15 }
  0x22   : > { %843 = vmatmul.msk.f32.gmra.mxu0 %vm283_vm0, %v1050_v4 }
  0x2a   : > { %844 = vmatmul.msk.f32.gmra.mxu0 %vm283_vm0, %v1056_v5 }
  0x32   : > { %845 = vmatmul.msk.f32.gmra.mxu0 %vm283_vm0, %v1064_v10 }
  0x3a   : > { %846 = vmatmul.msk.f32.gmra.mxu0 %vm283_vm0, %v1069_v12 }
  0x42   : > { %847 = vmatmul.msk.f32.gmra.mxu0 %vm283_vm0, %v1074_v13 }
  0x4a   : > { %848 = vmatmul.msk.f32.gmra.mxu0 %vm283_vm0, %v1079_v14 }
  0x8f   : > { %v1083_v16 = vpop.f32.mrf.mxu0 }
  0x90   : > { %849 = vmatmul.msk.f32.vlgmr.msra.gmra.mxu1 %vm349_vm1, %v1083_v16 }
  0x97   : > { %v1087_v17 = vpop.f32.mrf.mxu0 }
  0x98   : > { %850 = vmatmul.msk.f32.gmra.mxu1 %vm349_vm1, %v1087_v17 }
  0x9f   : > { %v1091_v18 = vpop.f32.mrf.mxu0 }
  0xa0   : > { %851 = vmatmul.msk.f32.gmra.mxu1 %vm349_vm1, %v1091_v18 }
  0xa7   : > { %v1095_v19 = vpop.f32.mrf.mxu0 }
  0xa8   : > { %852 = vmatmul.msk.f32.gmra.mxu1 %vm349_vm1, %v1095_v19 }
  0xaf   : > { %v1099_v20 = vpop.f32.mrf.mxu0 }
  0xb0   : > { %853 = vmatmul.msk.f32.gmra.mxu1 %vm349_vm1, %v1099_v20 }
  0xb7   : > { %v1103_v21 = vpop.f32.mrf.mxu0 }
  0xb8   : > { %854 = vmatmul.msk.f32.gmra.mxu1 %vm349_vm1, %v1103_v21 }
  0xbf   : > { %v1107_v22 = vpop.f32.mrf.mxu0 }
  0xc0   : > { %855 = vmatmul.msk.f32.gmra.mxu1 %vm349_vm1, %v1107_v22 }
  0xc7   : > { %v1111_v23 = vpop.f32.mrf.mxu0 }
  0xc8   : > { %856 = vmatmul.msk.f32.gmra.mxu1 %vm349_vm1, %v1111_v23  ;;  %v956_v36 = vpack.i.bf16 %v1107_v22, %v1111_v23 }
 0x10d   : > { %v391_v24 = vpop.f32.mrf.mxu1 }
 0x10e   : > { %v906_v25 = vpack.i.bf16 %v1083_v16, %v391_v24 }
 0x110   : > { %907 = vrot.lane.b32.xlu1 %v906_v25, %s985_s7  ;;  %897 = vrot.lane.b32.xlu0 %v906_v25, %s986_s8 }
 0x115   : > { %v394_v26 = vpop.f32.mrf.mxu1 }
 0x116   : > { %v911_v27 = vpack.i.bf16 %v1087_v17, %v394_v26 }
 0x118   : > { %912 = vrot.lane.b32.xlu1 %v911_v27, %s985_s7  ;;  %902 = vrot.lane.b32.xlu0 %v911_v27, %s986_s8 }
 0x11d   : > { %v1119_v28 = vpop.f32.mrf.mxu1 }
 0x11e   : > { %v926_v29 = vpack.i.bf16 %v1091_v18, %v1119_v28 }
 0x120   : > { %927 = vrot.lane.b32.xlu0 %v926_v29, %s985_s7  ;;  %917 = vrot.lane.b32.xlu2 %v926_v29, %s986_s8 }
 0x125   : > { %v1124_v30 = vpop.f32.mrf.mxu1 }
 0x126   : > { %v931_v31 = vpack.i.bf16 %v1095_v19, %v1124_v30 }
 0x128   : > { %932 = vrot.lane.b32.xlu1 %v931_v31, %s985_s7  ;;  %922 = vrot.lane.b32.xlu2 %v931_v31, %s986_s8 }
 0x12d   : > { %v1129_v32 = vpop.f32.mrf.mxu1 }
 0x12e   : > { %v946_v33 = vpack.i.bf16 %v1099_v20, %v1129_v32 }
 0x130   : > { %947 = vrot.lane.b32.xlu1 %v946_v33, %s985_s7  ;;  %937 = vrot.lane.b32.xlu2 %v946_v33, %s986_s8 }
 0x135   : > { %v1134_v34 = vpop.f32.mrf.mxu1 }
 0x136   : > { %v951_v35 = vpack.i.bf16 %v1103_v21, %v1134_v34 }
 0x138   : > { %952 = vrot.lane.b32.xlu2 %v951_v35, %s985_s7  ;;  %942 = vrot.lane.b32.xlu0 %v951_v35, %s986_s8 }
 0x139   : > { %957 = vrot.lane.b32.xlu1 %v956_v36, %s986_s8 }
 0x13d   : > { %v1141_v37 = vpop.f32.mrf.mxu1 }
 0x145   : > { %v1143_v38 = vpop.f32.mrf.mxu1 }
 0x146   : > { %v966_v39 = vpack.i.bf16 %v1141_v37, %v1143_v38 }
 0x148   : > { %967 = vrot.lane.b32.xlu2 %v966_v39, %s985_s7  ;;  %962 = vrot.lane.b32.xlu0 %v966_v39, %s986_s8 }
 0x150   : > { %972 = vrot.lane.b32.xlu0 %v956_v36, %s985_s7 }
 0x17a   : > { %v918_v44 = vpop.permute.xlu2 %917 }
 0x17b   : > { %v919_v53 = vunpack.i.l.bf16 %v918_v44  ;;  %v920_v57 = vunpack.i.h.bf16 %v918_v44 }
 0x182   : > { %v908_v40 = vpop.permute.xlu1 %907  ;;  %v898_v41 = vpop.permute.xlu0 %897 }
 0x183   : > { %v899_v42 = vunpack.i.l.bf16 %v898_v41  ;;  %v900_v43 = vunpack.i.h.bf16 %v898_v41  ;;  %v909_v45 = vunpack.i.l.bf16 %v908_v40  ;;  %v910_v46 = vunpack.i.h.bf16 %v908_v40  ;;  %v923_v52 = vpop.permute.xlu2 %922 }
 0x184   : > { %v924_v60 = vunpack.i.l.bf16 %v923_v52  ;;  %v925_v0 = vunpack.i.h.bf16 %v923_v52 }
 0x185   : > { %444 = vmatpush.msra.mxu2 %v899_v42  ;;  %v976_v42 = vld [vmem:[%s1231_s4] ss:$0 sm:$0xff] }
 0x187   : > { %445 = vmatpush.msra.mxu2 %v900_v43 }
 0x189   : > { %446 = vmatpush.msra.mxu2 %v909_v45 }
 0x18a   : > { %v903_v47 = vpop.permute.xlu0 %902  ;;  %v913_v49 = vpop.permute.xlu1 %912 }
 0x18b   : > { %447 = vmatpush.msra.mxu2 %v910_v46  ;;  %v904_v48 = vunpack.i.l.bf16 %v903_v47  ;;  %v905_v50 = vunpack.i.h.bf16 %v903_v47  ;;  %v914_v51 = vunpack.i.l.bf16 %v913_v49  ;;  %v915_v55 = vunpack.i.h.bf16 %v913_v49  ;;  %v938_v62 = vpop.permute.xlu2 %937 }
 0x18c   : > { %v940_v6 = vunpack.i.h.bf16 %v938_v62 }
 0x18d   : > { %448 = vmatpush.msra.mxu2 %v391_v24  ;;  %480 = vmatpush.msra.mxu3 %v904_v48 }
 0x18f   : > { %449 = vmatpush.msra.mxu2 %v1083_v16  ;;  %481 = vmatpush.msra.mxu3 %v905_v50 }
 0x191   : > { %450 = vmatpush.msra.mxu2 %v1040_v2  ;;  %482 = vmatpush.msra.mxu3 %v914_v51  ;;  %v939_v2 = vunpack.i.l.bf16 %v938_v62 }
 0x192   : > { %v928_v56 = vpop.permute.xlu0 %927  ;;  %857 = vmatmul.msk.f32.vlgmr.msra.gmra.mxu2 %vm428_vm2, %v1153_v54 }
 0x193   : > { %516 = vmatpush.msrb.mxu2 %v919_v53  ;;  %483 = vmatpush.msra.mxu3 %v915_v55  ;;  %v929_v58 = vunpack.i.l.bf16 %v928_v56  ;;  %v930_v59 = vunpack.i.h.bf16 %v928_v56  ;;  %v953_v15 = vpop.permute.xlu2 %952 }
 0x195   : > { %517 = vmatpush.msrb.mxu2 %v920_v57  ;;  %484 = vmatpush.msra.mxu3 %v394_v26 }
 0x197   : > { %518 = vmatpush.msrb.mxu2 %v929_v58  ;;  %485 = vmatpush.msra.mxu3 %v1087_v17  ;;  %v954_v17 = vunpack.i.l.bf16 %v953_v15 }
 0x199   : > { %519 = vmatpush.msrb.mxu2 %v930_v59  ;;  %486 = vmatpush.msra.mxu3 %v1045_v3 }
 0x19a   : > { %v933_v63 = vpop.permute.xlu1 %932  ;;  %858 = vmatmul.msk.f32.gmra.mxu2 %vm428_vm2, %v1162_v61  ;;  %859 = vmatmul.msk.f32.vlgmr.msra.gmra.mxu3 %vm428_vm2, %v1153_v54 }
 0x19b   : > { %520 = vmatpush.msrb.mxu2 %v1119_v28  ;;  %552 = vmatpush.msrb.mxu3 %v924_v60  ;;  %v934_v1 = vunpack.i.l.bf16 %v933_v63  ;;  %v935_v3 = vunpack.i.h.bf16 %v933_v63 }
 0x19d   : > { %521 = vmatpush.msrb.mxu2 %v1091_v18  ;;  %553 = vmatpush.msrb.mxu3 %v925_v0 }
 0x19f   : > { %522 = vmatpush.msrb.mxu2 %v1050_v4  ;;  %554 = vmatpush.msrb.mxu3 %v934_v1 }
 0x1a1   : > { %588 = vmatpush.msra.mxu2 %v939_v2  ;;  %555 = vmatpush.msrb.mxu3 %v935_v3 }
 0x1a2   : > { %v948_v7 = vpop.permute.xlu1 %947  ;;  %860 = vmatmul.msk.f32.gmra.mxu3 %vm428_vm2, %v1162_v61  ;;  %861 = vmatmul.msk.f32.vlgmr.msrb.gmra.mxu2 %vm428_vm2, %v1153_v54  ;;  %v968_v18 = vpop.permute.xlu2 %967 }
 0x1a3   : > { %589 = vmatpush.msra.mxu2 %v940_v6  ;;  %556 = vmatpush.msrb.mxu3 %v1124_v30  ;;  %v949_v8 = vunpack.i.l.bf16 %v948_v7  ;;  %v950_v9 = vunpack.i.h.bf16 %v948_v7  ;;  %v970_v25 = vunpack.i.h.bf16 %v968_v18  ;;  %v969_v27 = vunpack.i.l.bf16 %v968_v18 }
 0x1a5   : > { %557 = vmatpush.msrb.mxu3 %v1095_v19  ;;  %590 = vmatpush.msra.mxu2 %v949_v8 }
 0x1a7   : > { %558 = vmatpush.msrb.mxu3 %v1056_v5  ;;  %591 = vmatpush.msra.mxu2 %v950_v9  ;;  %v955_v5 = vunpack.i.h.bf16 %v953_v15 }
 0x1a9   : > { %592 = vmatpush.msra.mxu2 %v1129_v32 }
 0x1aa   : > { %v943_v4 = vpop.permute.xlu0 %942  ;;  %863 = vmatmul.msk.f32.vlgmr.msrb.gmra.mxu3 %vm428_vm2, %v1153_v54  ;;  %862 = vmatmul.msk.f32.gmra.mxu2 %vm428_vm2, %v1162_v61 }
 0x1ab   : > { %v944_v11 = vunpack.i.l.bf16 %v943_v4  ;;  %593 = vmatpush.msra.mxu2 %v1099_v20  ;;  %v945_v16 = vunpack.i.h.bf16 %v943_v4  ;;  %v958_v19 = vpop.permute.xlu1 %957 }
 0x1ac   : > { %v960_v26 = vunpack.i.h.bf16 %v958_v19  ;;  %v959_v28 = vunpack.i.l.bf16 %v958_v19 }
 0x1ad   : > { %624 = vmatpush.msra.mxu3 %v944_v11  ;;  %594 = vmatpush.msra.mxu2 %v1064_v10 }
 0x1af   : > { %625 = vmatpush.msra.mxu3 %v945_v16 }
 0x1b1   : > { %626 = vmatpush.msra.mxu3 %v954_v17 }
 0x1b2   : > { %864 = vmatmul.msk.f32.gmra.mxu3 %vm428_vm2, %v1162_v61  ;;  %865 = vmatmul.msk.f32.vlgmr.msra.gmra.mxu2 %vm428_vm2, %v1153_v54 }
 0x1b3   : > { %627 = vmatpush.msra.mxu3 %v955_v5 }
 0x1b5   : > { %628 = vmatpush.msra.mxu3 %v1134_v34 }
 0x1b7   : > { %629 = vmatpush.msra.mxu3 %v1103_v21 }
 0x1b9   : > { %630 = vmatpush.msra.mxu3 %v1069_v12 }
 0x1ba   : > { %v963_v10 = vpop.permute.xlu0 %962  ;;  %866 = vmatmul.msk.f32.gmra.mxu2 %vm428_vm2, %v1162_v61  ;;  %867 = vmatmul.msk.f32.vlgmr.msra.gmra.mxu3 %vm428_vm2, %v1153_v54 }
 0x1bb   : > { %v964_v20 = vunpack.i.l.bf16 %v963_v10  ;;  %v965_v24 = vunpack.i.h.bf16 %v963_v10 }
 0x1bd   : > { %660 = vmatpush.msrb.mxu0 %v965_v24  ;;  %878 = vmatpush.msrb.mxu2 %v965_v24 }
 0x1be   : > { %696 = vmatpush.msrb.mxu3 %v964_v20 }
 0x1bf   : > { %661 = vmatpush.msrb.mxu0 %v960_v26  ;;  %879 = vmatpush.msrb.mxu2 %v960_v26 }
 0x1c0   : > { %697 = vmatpush.msrb.mxu3 %v959_v28 }
 0x1c1   : > { %662 = vmatpush.msrb.mxu0 %v970_v25  ;;  %880 = vmatpush.msrb.mxu2 %v970_v25 }
 0x1c2   : > { %698 = vmatpush.msrb.mxu3 %v969_v27  ;;  %v973_v12 = vpop.permute.xlu0 %972 }
 0x1c3   : > { %v975_v21 = vunpack.i.h.bf16 %v973_v12  ;;  %v974_v29 = vunpack.i.l.bf16 %v973_v12  ;;  %868 = vmatmul.msk.f32.gmra.mxu3 %vm428_vm2, %v1162_v61 }
 0x1c5   : > { %663 = vmatpush.msrb.mxu0 %v975_v21  ;;  %881 = vmatpush.msrb.mxu2 %v975_v21 }
 0x1c6   : > { %699 = vmatpush.msrb.mxu3 %v974_v29 }
 0x1c7   : > { %664 = vmatpush.msrb.mxu0 %v1141_v37  ;;  %882 = vmatpush.msrb.mxu2 %v1141_v37 }
 0x1c8   : > { %700 = vmatpush.msrb.mxu3 %v1143_v38 }
 0x1c9   : > { %665 = vmatpush.msrb.mxu0 %v1107_v22  ;;  %883 = vmatpush.msrb.mxu2 %v1107_v22 }
 0x1ca   : > { %701 = vmatpush.msrb.mxu3 %v1111_v23 }
 0x1cb   : > { %666 = vmatpush.msrb.mxu0 %v1074_v13  ;;  %884 = vmatpush.msrb.mxu2 %v1074_v13 }
 0x1cc   : > { %869 = vmatmul.msk.f32.vlgmr.msrb.gmra.mxu0 %vm428_vm2, %v1153_v54  ;;  %870 = vmatmul.msk.f32.vlgmr.msrb.gmra.mxu2 %vm428_vm2, %v1162_v61 }
 0x1cd   : > { %702 = vmatpush.msrb.mxu3 %v1079_v14 }
 0x1ce   : > { %871 = vmatmul.msk.f32.vlgmr.msrb.gmra.mxu3 %vm428_vm2, %v1153_v54 }
 0x1d6   : > { %872 = vmatmul.msk.f32.gmra.mxu3 %vm428_vm2, %v1162_v61 }
 0x215   : > { %v452_v22 = vpop.f32.mrf.mxu2 }
 0x216   : > { %710 = vxpose.xlu1.b32.start [1/16] (narrow) %v452_v22, 16 }
 0x21d   : > { %v455_v23 = vpop.f32.mrf.mxu2  ;;  %v488_v30 = vpop.f32.mrf.mxu3 }
 0x21e   : > { %711 = vxpose.xlu1.b32.cont [2/16] (narrow) %v455_v23, 16 }
 0x225   : > { %v491_v13 = vpop.f32.mrf.mxu3  ;;  %v524_v31 = vpop.f32.mrf.mxu2 }
 0x226   : > { %712 = vxpose.xlu1.b32.cont [3/16] (narrow) %v488_v30, 16 }
 0x22d   : > { %v527_v32 = vpop.f32.mrf.mxu2  ;;  %v560_v33 = vpop.f32.mrf.mxu3 }
 0x22e   : > { %713 = vxpose.xlu1.b32.cont [4/16] (narrow) %v491_v13, 16 }
 0x235   : > { %v563_v14 = vpop.f32.mrf.mxu3  ;;  %v596_v34 = vpop.f32.mrf.mxu2 }
 0x236   : > { %714 = vxpose.xlu1.b32.cont [5/16] (narrow) %v524_v31, 16 }
 0x23d   : > { %v599_v35 = vpop.f32.mrf.mxu2  ;;  %v632_v36 = vpop.f32.mrf.mxu3 }
 0x23e   : > { %715 = vxpose.xlu1.b32.cont [6/16] (narrow) %v527_v32, 16 }
 0x246   : > { %716 = vxpose.xlu1.b32.cont [7/16] (narrow) %v560_v33, 16  ;;  %v635_v37 = vpop.f32.mrf.mxu3 }
 0x249   : > { %v668_v38 = vpop.f32.mrf.mxu0 }
 0x24e   : > { %717 = vxpose.xlu1.b32.cont [8/16] (narrow) %v563_v14, 16 }
 0x24f   : > { %v671_v39 = vpop.f32.mrf.mxu2 }
 0x251   : > { %v704_v40 = vpop.f32.mrf.mxu3 }
 0x256   : > { %718 = vxpose.xlu1.b32.cont [9/16] (narrow) %v596_v34, 16 }
 0x259   : > { %v707_v41 = vpop.f32.mrf.mxu3 }
 0x25e   : > { %719 = vxpose.xlu1.b32.cont [10/16] (narrow) %v599_v35, 16 }
 0x266   : > { %720 = vxpose.xlu1.b32.cont [11/16] (narrow) %v632_v36, 16 }
 0x26e   : > { %721 = vxpose.xlu1.b32.cont [12/16] (narrow) %v635_v37, 16 }
 0x276   : > { %722 = vxpose.xlu1.b32.cont [13/16] (narrow) %v668_v38, 16 }
 0x27e   : > { %723 = vxpose.xlu1.b32.cont [14/16] (narrow) %v671_v39, 16 }
 0x286   : > { %724 = vxpose.xlu1.b32.cont [15/16] (narrow) %v704_v40, 16 }
 0x28e   : > { %725 = vxpose.xlu1.b32.end [16/16] (narrow) %v707_v41, 16 }
 0x2ba   : > { %v726_v43 = vpop.trf.xlu1 }
 0x2bb   : > { %v746_v44 = vadd.f32 %v976_v42, %v726_v43 }
 0x2bd   : > { %748 = vst [vmem:[%s264_s17] sm:$0xff] %v746_v44 }
 0x2c2   : > { %v727_v45 = vpop.trf.xlu1 }
 0x2c3   : > { %v747_v46 = vadd.f32 %v976_v42, %v727_v45 }
 0x2c5   : > { %749 = vst [vmem:[%s264_s17 + $0x8] sm:$0xff] %v747_v46 }
 0x2c6 PF: > { %s15_s18 = sadd.s32 1, %s983_s18  }
 0x2c7   : > { %p12_p4 = scmp.ge.s32.totalorder %s15_s18, 4  }
 0x2c9   :  { %14 = sbr.rel (!%p12_p4) target bundleno = 1 (0x1), region = 76 }

</bundles_post_ra>
